<compile_context>
chip_gen: v7x
topology: tpu7x:2x2x1
jax: 0.10.0
libtpu: 0.0.40
codegen_flags: <defaults>
</compile_context>

<pallas_src>
import jax
import jax.numpy as jnp
from jax.experimental import pallas as pl
from jax.experimental.pallas import tpu as pltpu


# ---------------------------------------------------------------------------
# Kernels
# ---------------------------------------------------------------------------

def _fused_encoder_kernel(x_ref, adj_ref, w1_ref, b1_ref, w2_ref, b2_ref,
                          o_ref):
    """Single-shot fused 2-layer GCN for small (fully VMEM-resident) graphs."""
    cdt = adj_ref.dtype  # compute dtype fed to the MXU (bf16 or f32)

    # ---- layer 1: support = x @ W1 ; h1 = relu(adj @ support + b1) ----
    s1 = jnp.dot(x_ref[...], w1_ref[...], preferred_element_type=jnp.float32)
    h1 = jnp.dot(adj_ref[...], s1.astype(cdt),
                 preferred_element_type=jnp.float32)
    h1 = jnp.maximum(h1 + b1_ref[...], 0.0)

    # dropout(training=False) is the identity.
    # TODO(synk): wire pltpu.prng_random_bits-based inverted dropout if a
    #             training-mode kernel is ever needed.

    # ---- layer 2: support = h1 @ W2 ; out = relu(adj @ support + b2) ----
    s2 = jnp.dot(h1.astype(cdt), w2_ref[...],
                 preferred_element_type=jnp.float32)
    h2 = jnp.dot(adj_ref[...], s2.astype(cdt),
                 preferred_element_type=jnp.float32)
    o_ref[...] = jnp.maximum(h2 + b2_ref[...], 0.0).astype(o_ref.dtype)


def _transform_kernel(x_ref, w_ref, o_ref):
    """support[i_tile] = x[i_tile] @ W  (W fully resident, rows tiled)."""
    o_ref[...] = jnp.dot(x_ref[...], w_ref[...],
                         preferred_element_type=jnp.float32).astype(o_ref.dtype)


def _aggregate_transform_kernel(adj_ref, s_ref, b_ref, w2_ref, o_ref, acc_ref):
    """o[i_tile] = relu( sum_k adj[i_tile,k_tile] @ s[k_tile] + b ) @ W2.

    Fuses layer-1 aggregation with the layer-2 feature transform, avoiding an
    HBM round trip of the (N, nhid) hidden activation.
    """
    k = pl.program_id(1)

    @pl.when(k == 0)
    def _():
        acc_ref[...] = jnp.zeros_like(acc_ref)

    acc_ref[...] += jnp.dot(adj_ref[...], s_ref[...],
                            preferred_element_type=jnp.float32)

    # Bias broadcast + ReLU + W2 matmul only in the finalize branch (keeps the
    # inner k-loop pure MXU + accumulate; JAX does not CSE broadcast_in_dim).
    @pl.when(k == pl.num_programs(1) - 1)
    def _():
        h1 = jnp.maximum(acc_ref[...] + b_ref[...], 0.0)
        o_ref[...] = jnp.dot(h1.astype(w2_ref.dtype), w2_ref[...],
                             preferred_element_type=jnp.float32
                             ).astype(o_ref.dtype)


def _aggregate_kernel(adj_ref, s_ref, b_ref, o_ref, acc_ref):
    """o[i_tile] = relu( sum_k adj[i_tile, k_tile] @ support[k_tile] + b )."""
    k = pl.program_id(1)

    @pl.when(k == 0)
    def _():
        acc_ref[...] = jnp.zeros_like(acc_ref)

    acc_ref[...] += jnp.dot(adj_ref[...], s_ref[...],
                            preferred_element_type=jnp.float32)

    @pl.when(k == pl.num_programs(1) - 1)
    def _():
        o_ref[...] = jnp.maximum(acc_ref[...] + b_ref[...],
                                 0.0).astype(o_ref.dtype)


# ---------------------------------------------------------------------------
# Wrappers
# ---------------------------------------------------------------------------

_SMALL_N = 1024  # below this, one fused VMEM-resident kernel is fastest


def _round_up(v, m):
    return (v + m - 1) // m * m


def _pad2d(a, rows, cols):
    r, c = a.shape
    if r == rows and c == cols:
        return a
    return jnp.pad(a, ((0, rows - r), (0, cols - c)))


def _pick_tiles():
    """Per-generation (row_tile, contraction_tile); tk is a multiple of tm."""
    try:
        kind = jax.devices()[0].device_kind.lower()
    except Exception:  # pragma: no cover
        kind = ""
    if "v5" in kind:           # 128-wide MXU, 16 MiB default scoped VMEM
        return 128, 512
    return 256, 512            # v6e / v7x: 256-wide MXU


def _transform(x, w, out_dtype, tm):
    n, f = x.shape
    h = w.shape[1]
    return pl.pallas_call(
        _transform_kernel,
        out_shape=jax.ShapeDtypeStruct((n, h), out_dtype),
        grid_spec=pltpu.PrefetchScalarGridSpec(
            num_scalar_prefetch=0,
            grid=(n // tm,),
            in_specs=[pl.BlockSpec((tm, f), lambda i: (i, 0)),
                      pl.BlockSpec((f, h), lambda i: (0, 0))],
            out_specs=pl.BlockSpec((tm, h), lambda i: (i, 0))),
        compiler_params=pltpu.CompilerParams(
            dimension_semantics=("parallel",)),
    )(x, w)


def _aggregate_transform(adj, support, bias, w2, out_dtype, tm, tk):
    n = adj.shape[0]
    h_in = support.shape[1]
    h_out = w2.shape[1]
    return pl.pallas_call(
        _aggregate_transform_kernel,
        out_shape=jax.ShapeDtypeStruct((n, h_out), out_dtype),
        grid_spec=pltpu.PrefetchScalarGridSpec(
            num_scalar_prefetch=0,
            grid=(n // tm, n // tk),
            in_specs=[pl.BlockSpec((tm, tk), lambda i, k: (i, k)),
                      pl.BlockSpec((tk, h_in), lambda i, k: (k, 0)),
                      pl.BlockSpec((1, h_in), lambda i, k: (0, 0)),
                      pl.BlockSpec((h_in, h_out), lambda i, k: (0, 0))],
            out_specs=pl.BlockSpec((tm, h_out), lambda i, k: (i, 0)),
            scratch_shapes=[pltpu.VMEM((tm, h_in), jnp.float32)]),
        compiler_params=pltpu.CompilerParams(
            dimension_semantics=("parallel", "arbitrary")),
    )(adj, support, bias, w2)


def _aggregate(adj, support, bias, out_dtype, tm, tk):
    n = adj.shape[0]
    h = support.shape[1]
    return pl.pallas_call(
        _aggregate_kernel,
        out_shape=jax.ShapeDtypeStruct((n, h), out_dtype),
        grid_spec=pltpu.PrefetchScalarGridSpec(
            num_scalar_prefetch=0,
            grid=(n // tm, n // tk),
            in_specs=[pl.BlockSpec((tm, tk), lambda i, k: (i, k)),
                      pl.BlockSpec((tk, h), lambda i, k: (k, 0)),
                      pl.BlockSpec((1, h), lambda i, k: (0, 0))],
            out_specs=pl.BlockSpec((tm, h), lambda i, k: (i, 0)),
            scratch_shapes=[pltpu.VMEM((tm, h), jnp.float32)]),
        compiler_params=pltpu.CompilerParams(
            dimension_semantics=("parallel", "arbitrary")),
    )(adj, support, bias)


def encoder_forward(x, adj, w1, b1, w2, b2, *, use_bf16=True,
                    force_tiled=False):
    """Fused 2-layer GCN encoder. x:[N,F], adj:[N,N] -> [N, nhid] (f32)."""
    n, f = x.shape
    assert adj.shape == (n, n)
    h1_dim = w1.shape[1]
    h2_dim = w2.shape[1]

    cdt = jnp.bfloat16 if use_bf16 else jnp.float32
    fp = _round_up(f, 128)
    hp1 = _round_up(h1_dim, 128)
    hp2 = _round_up(h2_dim, 128)

    b1r = jnp.reshape(b1, (1, -1))
    b2r = jnp.reshape(b2, (1, -1))

    if (not force_tiled) and n <= _SMALL_N:
        # ------- small-graph path: single fused VMEM-resident kernel -------
        npad = _round_up(n, 8)
        xp = _pad2d(x, npad, fp).astype(cdt)
        adjp = _pad2d(adj, npad, npad).astype(cdt)
        w1p = _pad2d(w1, fp, hp1).astype(cdt)
        w2p = _pad2d(w2, hp1, hp2).astype(cdt)
        b1p = _pad2d(b1r, 1, hp1).astype(jnp.float32)
        b2p = _pad2d(b2r, 1, hp2).astype(jnp.float32)

        vmem = pl.BlockSpec(memory_space=pltpu.MemorySpace.VMEM)
        out = pl.pallas_call(
            _fused_encoder_kernel,
            out_shape=jax.ShapeDtypeStruct((npad, hp2), jnp.float32),
            in_specs=[vmem] * 6,
            out_specs=vmem,
        )(xp, adjp, w1p, b1p, w2p, b2p)
        return out[:n, :h2_dim]

    # ----------------- large-graph path: tiled + pipelined -----------------
    tm, tk = _pick_tiles()
    assert tk % tm == 0
    npad = _round_up(n, tk)

    xp = _pad2d(x, npad, fp).astype(cdt)
    adjp = _pad2d(adj, npad, npad).astype(cdt)
    w1p = _pad2d(w1, fp, hp1).astype(cdt)
    w2p = _pad2d(w2, hp1, hp2).astype(cdt)
    b1p = _pad2d(b1r, 1, hp1).astype(jnp.float32)
    b2p = _pad2d(b2r, 1, hp2).astype(jnp.float32)

    s1 = _transform(xp, w1p, cdt, tm)                       # x @ W1
    # dropout(training=False) == identity
    s2 = _aggregate_transform(adjp, s1, b1p, w2p, cdt, tm, tk)
    #                                  ^ relu(adj @ s1 + b1) @ W2 (fused)
    out = _aggregate(adjp, s2, b2p, jnp.float32, tm, tk)     # relu(adj@s2 + b2)
    return out[:n, :h2_dim]


# ---------------------------------------------------------------------------
# Reference + demo
# ---------------------------------------------------------------------------

def _init_gc_params(key, in_features, out_features):
    """Mirror pygcn GraphConvolution init: U(-stdv, stdv), stdv=1/sqrt(out)."""
    kw, kb = jax.random.split(key)
    stdv = 1.0 / jnp.sqrt(jnp.float32(out_features))
    w = jax.random.uniform(kw, (in_features, out_features),
                           minval=-stdv, maxval=stdv, dtype=jnp.float32)
    b = jax.random.uniform(kb, (1, out_features),
                           minval=-stdv, maxval=stdv, dtype=jnp.float32)
    return w, b


def _reference(x, adj, w1, b1, w2, b2, compute_dtype=jnp.bfloat16):
    """Plain-JAX mirror of the kernel pipeline (same cast points)."""
    cdt = compute_dtype
    xb, ab = x.astype(cdt), adj.astype(cdt)
    w1b, w2b = w1.astype(cdt), w2.astype(cdt)
    b1r, b2r = jnp.reshape(b1, (1, -1)), jnp.reshape(b2, (1, -1))
    s1 = jnp.dot(xb, w1b, preferred_element_type=jnp.float32).astype(cdt)
    h1 = jnp.maximum(
        jnp.dot(ab, s1, preferred_element_type=jnp.float32) + b1r, 0.0)
    s2 = jnp.dot(h1.astype(cdt), w2b,
                 preferred_element_type=jnp.float32).astype(cdt)
    return jnp.maximum(
        jnp.dot(ab, s2, preferred_element_type=jnp.float32) + b2r, 0.0)


def _make_inputs(key, n, nfeat, nhid):
    kx, kadj, k1, k2 = jax.random.split(key, 4)
    x = jax.random.normal(kx, (n, nfeat), dtype=jnp.float32)
    # dense, row-normalized adjacency with self-loops (what DOMINANT feeds in)
    a = (jax.random.uniform(kadj, (n, n)) > 0.5).astype(jnp.float32)
    a = a + jnp.eye(n, dtype=jnp.float32)
    adj = a / jnp.sum(a, axis=1, keepdims=True)
    w1, b1 = _init_gc_params(k1, nfeat, nhid)
    w2, b2 = _init_gc_params(k2, nhid, nhid)
    return x, adj, w1, b1, w2, b2


if __name__ == "__main__":
    key = jax.random.PRNGKey(0)

    # --- small graph: fused single-shot path (N=8, nfeat=16, nhid=32) ---
    N, NFEAT, NHID = 8, 16, 32
    args_s = _make_inputs(jax.random.fold_in(key, 0), N, NFEAT, NHID)
    out_s = jax.block_until_ready(encoder_forward(*args_s))
    ref_s = _reference(*args_s)
    assert out_s.shape == (N, NHID)
    assert jnp.allclose(out_s, ref_s, atol=1e-4, rtol=1e-3)

    # --- larger graph: exercises the tiled / pipelined path ---
    N2, NFEAT2, NHID2 = 640, 300, 64
    args_l = _make_inputs(jax.random.fold_in(key, 1), N2, NFEAT2, NHID2)
    out_l = jax.block_until_ready(
        encoder_forward(*args_l, force_tiled=True))
    ref_l = _reference(*args_l)
    assert out_l.shape == (N2, NHID2)
    assert jnp.allclose(out_l, ref_l, atol=1e-3, rtol=1e-2)

    print("KERNEL_OK")
</pallas_src>

<mosaic_0001>
module attributes {stable_mosaic.version = 11 : i64} {
  func.func @_fused_encoder_kernel(%arg0: memref<8x128xbf16, #tpu.memory_space<vmem>>, %arg1: memref<8x8xbf16, #tpu.memory_space<vmem>>, %arg2: memref<128x128xbf16, #tpu.memory_space<vmem>>, %arg3: memref<1x128xf32, #tpu.memory_space<vmem>>, %arg4: memref<128x128xbf16, #tpu.memory_space<vmem>>, %arg5: memref<1x128xf32, #tpu.memory_space<vmem>>, %arg6: memref<8x128xf32, #tpu.memory_space<vmem>>) attributes {dimension_semantics = [], scalar_prefetch = 0 : i64, scratch_operands = 0 : i64, tpu.core_type = #tpu.core_type<tc>} {
    %c0 = arith.constant 0 : index
    %c0_0 = arith.constant 0 : index
    %0 = vector.load %arg0[%c0, %c0_0] : memref<8x128xbf16, #tpu.memory_space<vmem>>, vector<8x128xbf16>
    %c0_1 = arith.constant 0 : index
    %c0_2 = arith.constant 0 : index
    %1 = vector.load %arg2[%c0_1, %c0_2] : memref<128x128xbf16, #tpu.memory_space<vmem>>, vector<128x128xbf16>
    %cst = arith.constant dense<0.000000e+00> : vector<8x128xf32>
    %2 = tpu.matmul %0, %1, %cst {dimension_numbers = #tpu.dot_dimension_numbers<[1], [0], [0], [1], [0, 0, 1, 1], [], []>} : vector<8x128xbf16>, vector<128x128xbf16>, vector<8x128xf32> -> vector<8x128xf32>
    %c0_3 = arith.constant 0 : index
    %c0_4 = arith.constant 0 : index
    %3 = vector.load %arg1[%c0_3, %c0_4] : memref<8x8xbf16, #tpu.memory_space<vmem>>, vector<8x8xbf16>
    %4 = arith.truncf %2 : vector<8x128xf32> to vector<8x128xbf16>
    %cst_5 = arith.constant dense<0.000000e+00> : vector<8x128xf32>
    %5 = tpu.matmul %3, %4, %cst_5 {dimension_numbers = #tpu.dot_dimension_numbers<[1], [0], [0], [1], [0, 0, 1, 1], [], []>} : vector<8x8xbf16>, vector<8x128xbf16>, vector<8x128xf32> -> vector<8x128xf32>
    %c0_6 = arith.constant 0 : index
    %c0_7 = arith.constant 0 : index
    %6 = vector.load %arg3[%c0_6, %c0_7] : memref<1x128xf32, #tpu.memory_space<vmem>>, vector<1x128xf32>
    %7 = vector.broadcast %6 : vector<1x128xf32> to vector<8x128xf32>
    %8 = arith.addf %5, %7 : vector<8x128xf32>
    %cst_8 = arith.constant 0.000000e+00 : f32
    %9 = vector.broadcast %cst_8 : f32 to vector<8x128xf32>
    %10 = arith.maximumf %8, %9 : vector<8x128xf32>
    %11 = arith.truncf %10 : vector<8x128xf32> to vector<8x128xbf16>
    %c0_9 = arith.constant 0 : index
    %c0_10 = arith.constant 0 : index
    %12 = vector.load %arg4[%c0_9, %c0_10] : memref<128x128xbf16, #tpu.memory_space<vmem>>, vector<128x128xbf16>
    %cst_11 = arith.constant dense<0.000000e+00> : vector<8x128xf32>
    %13 = tpu.matmul %11, %12, %cst_11 {dimension_numbers = #tpu.dot_dimension_numbers<[1], [0], [0], [1], [0, 0, 1, 1], [], []>} : vector<8x128xbf16>, vector<128x128xbf16>, vector<8x128xf32> -> vector<8x128xf32>
    %c0_12 = arith.constant 0 : index
    %c0_13 = arith.constant 0 : index
    %14 = vector.load %arg1[%c0_12, %c0_13] : memref<8x8xbf16, #tpu.memory_space<vmem>>, vector<8x8xbf16>
    %15 = arith.truncf %13 : vector<8x128xf32> to vector<8x128xbf16>
    %cst_14 = arith.constant dense<0.000000e+00> : vector<8x128xf32>
    %16 = tpu.matmul %14, %15, %cst_14 {dimension_numbers = #tpu.dot_dimension_numbers<[1], [0], [0], [1], [0, 0, 1, 1], [], []>} : vector<8x8xbf16>, vector<8x128xbf16>, vector<8x128xf32> -> vector<8x128xf32>
    %c0_15 = arith.constant 0 : index
    %c0_16 = arith.constant 0 : index
    %17 = vector.load %arg5[%c0_15, %c0_16] : memref<1x128xf32, #tpu.memory_space<vmem>>, vector<1x128xf32>
    %18 = vector.broadcast %17 : vector<1x128xf32> to vector<8x128xf32>
    %19 = arith.addf %16, %18 : vector<8x128xf32>
    %cst_17 = arith.constant 0.000000e+00 : f32
    %20 = vector.broadcast %cst_17 : f32 to vector<8x128xf32>
    %21 = arith.maximumf %19, %20 : vector<8x128xf32>
    %c0_18 = arith.constant 0 : index
    %c0_19 = arith.constant 0 : index
    %22 = vector.load %arg6[%c0_18, %c0_19] : memref<8x128xf32, #tpu.memory_space<vmem>>, vector<8x128xf32>
    tpu.vector_store %arg6[%c0_18, %c0_19], %21 {strides = array<i32>} : memref<8x128xf32, #tpu.memory_space<vmem>>, vector<8x128xf32>,
    return
  }
}

</mosaic_0001>

<bundles_post_ra>
// kernel: tpu_custom_call.1
= control target key start
LH: loop header
LB: loop body
LE: loop exit
PB: predicated region body
PF: predicated region fallthrough
CT: control target
= control target key end

     0   :  { %11 = vsyncpa [#allocation3], 0  ;;  %s791_s0 = inlined_call_operand.hbm [shape: bf16[8,128], index: 0, kind: input, shape index: {}]   ;;  %s792_s1 = inlined_call_operand.hbm [shape: bf16[8,8], index: 1, kind: input, shape index: {}]   ;;  %s793_s2 = inlined_call_operand.hbm [shape: bf16[128,128], index: 2, kind: input, shape index: {}]   ;;  %s794_s3 = inlined_call_operand.vmem [shape: f32[1,128], index: 3, kind: input, shape index: {}]   ;;  %s795_s4 = inlined_call_operand.hbm [shape: bf16[128,128], index: 4, kind: input, shape index: {}]   ;;  %s796_s5 = inlined_call_operand.vmem [shape: f32[1,128], index: 5, kind: input, shape index: {}]   ;;  %s797_s6 = inlined_call_operand.hbm [shape: f32[8,128], index: 6, kind: output, shape index: {}]  }
   0x1   :  { %12 = vsyncpa [#allocation6], 0 }
   0x2   :  { %13 = vsyncpa [#allocation9], 0 }
   0x3   :  { %14 = vsyncpa [#allocation4], 0  ;;  %s651_s21 = smov [#allocation5]   ;;  %s652_s23 = smov [#allocation2]  }
   0x4   :  { %s31_s22 = sshll.u32 %s651_s21, 4  ;;  %s21_s24 = sshll.u32 %s652_s23, 4  ;;  %s32_s22 = int_to_ptr.vmem [resolvable:$true] %s31_s22  ;;  %s22_s24 = int_to_ptr.vmem [resolvable:$true] %s21_s24 }
   0x5   :  { %s533_s27 = scalar_lea.hbm %s792_s1, 64 }
   0x6   :  { %p534_p0 = scmp.ne.s32.totalorder %s792_s1, %s533_s27  ;;  %p537_p1 = scmp.lt.u32.totalorder %s533_s27, %s792_s1 }
   0x8   :  { %p539_p2 = pnand %p537_p1, %p534_p0 }
   0xa   :  { %542 = shalt.err (!%p539_p2)
}
   0xb   :  { %s543_s8 = scalar_lea.vmem %s32_s22, 64  ;;  %p548_p4 = scmp.lt.s32.totalorder %s32_s22, %s32_s22 }
   0xc   :  { %p544_p3 = scmp.ne.s32.totalorder %s32_s22, %s543_s8  ;;  %p549_p5 = scmp.lt.s32.totalorder %s543_s8, %s543_s8 }
   0xe   :  { %p550_p6 = por %p549_p5, %p548_p4 }
  0x10   :  { %p551_p7 = pnand %p550_p6, %p544_p3 }
  0x12   :  { %554 = shalt.err (!%p551_p7)
}
  0x13   :  { %34 = dma.hbm_to_vmem [thread:$0]  %s792_s1, 64, %s32_s22, [#allocation6]  }
  0x14   :  { %s555_s13 = scalar_lea.hbm %s791_s0, 64 }
  0x15   :  { %p556_p8 = scmp.ne.s32.totalorder %s791_s0, %s555_s13  ;;  %p559_p9 = scmp.lt.u32.totalorder %s555_s13, %s791_s0 }
  0x17   :  { %p561_p10 = pnand %p559_p9, %p556_p8 }
  0x19   :  { %564 = shalt.err (!%p561_p10)
}
  0x1a   :  { %s565_s18 = scalar_lea.vmem %s22_s24, 64  ;;  %p570_p12 = scmp.lt.s32.totalorder %s22_s24, %s22_s24 }
  0x1b   :  { %p566_p11 = scmp.ne.s32.totalorder %s22_s24, %s565_s18  ;;  %p571_p13 = scmp.lt.s32.totalorder %s565_s18, %s565_s18 }
  0x1d   :  { %p572_p0 = por %p571_p13, %p570_p12 }
  0x1f   :  { %p573_p1 = pnand %p572_p0, %p566_p11 }
  0x21   :  { %576 = shalt.err (!%p573_p1)
}
  0x22   :  { %24 = dma.hbm_to_vmem [thread:$0]  %s791_s0, 64, %s22_s24, [#allocation3]  }
  0x23   :  { %s653_s20 = smov [#allocation7]   ;;  %s577_s25 = scalar_lea.hbm %s793_s2, 1024 }
  0x24   :  { %s40_s21 = sshll.u32 %s653_s20, 4  ;;  %p578_p2 = scmp.ne.s32.totalorder %s793_s2, %s577_s25  ;;  %s41_s21 = int_to_ptr.vmem [resolvable:$true] %s40_s21 }
  0x25   :  { %p581_p3 = scmp.lt.u32.totalorder %s577_s25, %s793_s2 }
  0x27   :  { %p583_p4 = pnand %p581_p3, %p578_p2 }
  0x29   :  { %586 = shalt.err (!%p583_p4)
}
  0x2a   :  { %s587_s30 = scalar_lea.vmem %s41_s21, 1024  ;;  %p592_p6 = scmp.lt.s32.totalorder %s41_s21, %s41_s21 }
  0x2b   :  { %p588_p5 = scmp.ne.s32.totalorder %s41_s21, %s587_s30  ;;  %p593_p7 = scmp.lt.s32.totalorder %s587_s30, %s587_s30 }
  0x2d   :  { %p594_p8 = por %p593_p7, %p592_p6 }
  0x2f   :  { %p595_p9 = pnand %p594_p8, %p588_p5 }
  0x31   :  { %598 = shalt.err (!%p595_p9)
}
  0x32   :  { %s654_s0 = smov 64   ;;  %s655_s24 = smov 4  }
  0x33   :  { %46 = dma.hbm_to_vmem [thread:$0]  %s793_s2, 1024, %s41_s21, [#allocation6], %s654_s0, %s654_s0, %s655_s24  }
  0x34   :  { %s656_s9 = smov [#allocation8]   ;;  %s599_s13 = scalar_lea.hbm %s795_s4, 1024 }
  0x35   :  { %s54_s10 = sshll.u32 %s656_s9, 4  ;;  %p600_p10 = scmp.ne.s32.totalorder %s795_s4, %s599_s13  ;;  %s55_s10 = int_to_ptr.vmem [resolvable:$true] %s54_s10 }
  0x36   :  { %p603_p11 = scmp.lt.u32.totalorder %s599_s13, %s795_s4 }
  0x38   :  { %p605_p12 = pnand %p603_p11, %p600_p10 }
  0x3a   :  { %608 = shalt.err (!%p605_p12)
}
  0x3b   :  { %s609_s18 = scalar_lea.vmem %s55_s10, 1024  ;;  %p614_p0 = scmp.lt.s32.totalorder %s55_s10, %s55_s10 }
  0x3c   :  { %p610_p13 = scmp.ne.s32.totalorder %s55_s10, %s609_s18  ;;  %p615_p1 = scmp.lt.s32.totalorder %s609_s18, %s609_s18 }
  0x3e   :  { %p616_p2 = por %p615_p1, %p614_p0 }
  0x40   :  { %p617_p3 = pnand %p616_p2, %p610_p13 }
  0x42   :  { %620 = shalt.err (!%p617_p3)
}
  0x43   :  { %60 = dma.hbm_to_vmem [thread:$0]  %s795_s4, 1024, %s55_s10, [#allocation9], %s654_s0, %s654_s0, %s655_s24  }
  0x44   :  { %643 = dma.done.wait [#allocation3], 64  }
  0x45   :  { %644 = vsyncadd [#allocation3], 4294967232 }
  0x46   :  { %645 = dma.done.wait [#allocation6], 1088  }
  0x47   :  { %646 = vsyncadd [#allocation6], 4294966208 }
  0x48   :  { %647 = dma.done.wait [#allocation9], 1024  }
  0x49   :  { %648 = vsyncadd [#allocation9], 4294966272  ;;  %v657_v0 = vmov 0.0   ;;  %vm658_vm0 = vmmov 0   ;;  %v517_v1 = vld [vmem:[#allocation7] sm:$0xff]   ;;  %v518_v2 = vld [vmem:[#allocation7 + $0x8] sm:$0xff]  }
  0x4a   :  { %456 = vmatprep.subr.bf16.mxu0 %v657_v0  ;;  %472 = vmatprep.mubr.msk.bf16.mxu0 %vm658_vm0, %v657_v0  ;;  %v519_v3 = vld [vmem:[#allocation7 + $0x10] sm:$0xff]   ;;  %v520_v4 = vld [vmem:[#allocation7 + $0x18] sm:$0xff]   ;;  %v521_v5 = vld [vmem:[#allocation7 + $0x20] sm:$0xff]   ;;  %vm194_vm1 = vcmask 1043456   ;;  %vm190_vm2 = vcmask 64512   ;;  %s659_s21 = smov [#allocation10]  }
  0x4b   :  { %476 = vmatprep.subr.bf16.mxu1 %v657_v0  ;;  %478 = vmatprep.mubr.msk.bf16.mxu1 %vm658_vm0, %v657_v0  ;;  %v522_v6 = vld [vmem:[#allocation7 + $0x28] sm:$0xff]   ;;  %v523_v7 = vld [vmem:[#allocation7 + $0x30] sm:$0xff]   ;;  %v524_v8 = vld [vmem:[#allocation7 + $0x38] sm:$0xff]   ;;  %s403_s22 = sshll.u32 %s659_s21, 4  ;;  %s404_s22 = int_to_ptr.vmem [resolvable:$true] %s403_s22 }
  0x4c   :  { %457 = vmatpush3.bf16.msra.mxu0 %v517_v1  ;;  %v76_v9 = vld [vmem:[#allocation2] sm:$0xf]  ;;  %v181_v16 = vld [vmem:[#allocation5] sm:$0xf]  ;;  %v525_v17 = vld [vmem:[#allocation8] sm:$0xff]   ;;  %s621_s23 = scalar_lea.vmem %s404_s22, 128  ;;  %p626_p5 = scmp.lt.s32.totalorder %s404_s22, %s404_s22 }
  0x4d   :  { %458 = vmatprep.subr.bf16.mxu0 %v657_v0  ;;  %v526_v18 = vld [vmem:[#allocation8 + $0x8] sm:$0xff]   ;;  %v527_v19 = vld [vmem:[#allocation8 + $0x10] sm:$0xff]   ;;  %v528_v20 = vld [vmem:[#allocation8 + $0x18] sm:$0xff]   ;;  %p622_p4 = scmp.ne.s32.totalorder %s404_s22, %s621_s23  ;;  %p627_p6 = scmp.lt.s32.totalorder %s621_s23, %s621_s23 }
  0x4e   :  { %v529_v21 = vld [vmem:[#allocation8 + $0x20] sm:$0xff]   ;;  %v530_v22 = vld [vmem:[#allocation8 + $0x28] sm:$0xff]   ;;  %v531_v23 = vld [vmem:[#allocation8 + $0x30] sm:$0xff]  }
  0x4f   :  { %v532_v24 = vld [vmem:[#allocation8 + $0x38] sm:$0xff]   ;;  %p628_p7 = por %p627_p6, %p626_p5 }
  0x50   :  { %459 = vmatpush3.bf16.msra.mxu0 %v518_v2  ;;  %v422_v25 = vld [vmem:[%s794_s3] ss:$0 sm:$0xff] }
  0x51   :  { %460 = vmatprep.subr.bf16.mxu0 %v657_v0  ;;  %v432_v39 = vld [vmem:[%s796_s5] ss:$0 sm:$0xff]  ;;  %p629_p8 = pnand %p628_p7, %p622_p4 }
  0x54   :  { %461 = vmatpush3.bf16.msra.mxu0 %v519_v3 }
  0x55   :  { %462 = vmatprep.subr.bf16.mxu0 %v657_v0 }
  0x58   :  { %463 = vmatpush3.bf16.msra.mxu0 %v520_v4 }
  0x59   :  { %464 = vmatprep.subr.bf16.mxu0 %v657_v0 }
  0x5c   :  { %465 = vmatpush3.bf16.msra.mxu0 %v521_v5 }
  0x5d   :  { %466 = vmatprep.subr.bf16.mxu0 %v657_v0 }
  0x60   :  { %467 = vmatpush3.bf16.msra.mxu0 %v522_v6 }
  0x61   :  { %468 = vmatprep.subr.bf16.mxu0 %v657_v0 }
  0x64   :  { %469 = vmatpush3.bf16.msra.mxu0 %v523_v7 }
  0x65   :  { %470 = vmatprep.subr.bf16.mxu0 %v657_v0 }
  0x68   :  { %471 = vmatpush3.bf16.msra.mxu0 %v524_v8 }
  0x69   :  { %502 = vmatprep.subr.bf16.mxu0 %v657_v0 }
  0x6b   :  { %473 = vmatmul.mubr.bf16.vlgmr.msra.gmra.mrb[0].mxu0 %v76_v9 }
  0x6c   :  { %504 = vmatprep.mubr.msk.bf16.mxu0 %vm658_vm0, %v657_v0 }
 0x13e   :  { %v175_v10 = vpop.f32.mrb[0].mxu0 }
 0x13f   :  { %v182_v11 = vpack.c.bf16 %v175_v10, %v175_v10  ;;  %v474_v12 = vpop.f32.mrb[1].mxu0 }
 0x140   :  { %v178_v13 = vpop.f32.mrb[2].mxu0 }
 0x141   :  { %v475_v14 = vpop.f32.mrb[3].mxu0  ;;  %v196_v15 = vsel %vm194_vm1, %v182_v11, 0 }
 0x142   :  { %477 = vmatpush3.bf16.msra.mxu1 %v196_v15 }
 0x143   :  { %482 = vmatprep.subr.bf16.mxu1 %v657_v0 }
 0x145   :  { %479 = vmatmul.mubr.msk.bf16.vlgmr.msra.gmra.mrb[0].mxu1 %vm190_vm2, %v181_v16 }
 0x146   :  { %483 = vmatpush3.bf16.msra.mxu1 %v525_v17  ;;  %498 = vmatprep.mubr.msk.bf16.mxu1 %vm658_vm0, %v657_v0 }
 0x147   :  { %484 = vmatprep.subr.bf16.mxu1 %v657_v0 }
 0x14a   :  { %485 = vmatpush3.bf16.msra.mxu1 %v526_v18 }
 0x14b   :  { %486 = vmatprep.subr.bf16.mxu1 %v657_v0 }
 0x14e   :  { %487 = vmatpush3.bf16.msra.mxu1 %v527_v19 }
 0x14f   :  { %488 = vmatprep.subr.bf16.mxu1 %v657_v0 }
 0x152   :  { %489 = vmatpush3.bf16.msra.mxu1 %v528_v20 }
 0x153   :  { %490 = vmatprep.subr.bf16.mxu1 %v657_v0 }
 0x156   :  { %491 = vmatpush3.bf16.msra.mxu1 %v529_v21 }
 0x157   :  { %492 = vmatprep.subr.bf16.mxu1 %v657_v0 }
 0x15a   :  { %493 = vmatpush3.bf16.msra.mxu1 %v530_v22 }
 0x15b   :  { %494 = vmatprep.subr.bf16.mxu1 %v657_v0 }
 0x15e   :  { %495 = vmatpush3.bf16.msra.mxu1 %v531_v23 }
 0x15f   :  { %496 = vmatprep.subr.bf16.mxu1 %v657_v0 }
 0x162   :  { %497 = vmatpush3.bf16.msra.mxu1 %v532_v24 }
 0x218   :  { %v232_v26 = vpop.f32.mrb[0].mxu1 }
 0x219   :  { %v233_v27 = vadd.f32 %v422_v25, %v232_v26  ;;  %v480_v28 = vpop.f32.mrb[1].mxu1 }
 0x21a   :  { %v235_v29 = vpop.f32.mrb[2].mxu1 }
 0x21b   :  { %v238_v30 = vmax.f32 %v233_v27, 0.0  ;;  %v481_v31 = vpop.f32.mrb[3].mxu1 }
 0x21d   :  { %v239_v32 = vpack.c.bf16 %v238_v30, %v238_v30 }
 0x21f   :  { %499 = vmatmul.mubr.bf16.vlgmr.msra.gmra.mrb[4].mxu1 %v239_v32 }
 0x2f2   :  { %v338_v33 = vpop.f32.mrb[4].mxu1 }
 0x2f3   :  { %v344_v34 = vpack.c.bf16 %v338_v33, %v338_v33  ;;  %v500_v35 = vpop.f32.mrb[5].mxu1 }
 0x2f4   :  { %v341_v36 = vpop.f32.mrb[6].mxu1 }
 0x2f5   :  { %v353_v37 = vsel %vm194_vm1, %v344_v34, 0  ;;  %v501_v38 = vpop.f32.mrb[7].mxu1 }
 0x2f6   :  { %503 = vmatpush3.bf16.msra.mxu0 %v353_v37 }
 0x2f9   :  { %505 = vmatmul.mubr.msk.bf16.vlgmr.msra.gmra.mrb[4].mxu0 %vm190_vm2, %v181_v16 }
 0x3cc   :  { %v389_v40 = vpop.f32.mrb[4].mxu0 }
 0x3cd   :  { %v390_v41 = vadd.f32 %v432_v39, %v389_v40  ;;  %v506_v42 = vpop.f32.mrb[5].mxu0 }
 0x3ce   :  { %v392_v43 = vpop.f32.mrb[6].mxu0 }
 0x3cf   :  { %v395_v44 = vmax.f32 %v390_v41, 0.0  ;;  %v507_v45 = vpop.f32.mrb[7].mxu0 }
 0x3d1   :  { %396 = vst [vmem:[#allocation10] sm:$0xff] %v395_v44 }
 0x3d2   :  { %632 = shalt.err (!%p629_p8)
}
 0x3d3   :  { %s633_s5 = scalar_lea.hbm %s797_s6, 128 }
 0x3d4   :  { %p634_p9 = scmp.ne.s32.totalorder %s797_s6, %s633_s5  ;;  %p637_p10 = scmp.lt.u32.totalorder %s633_s5, %s797_s6 }
 0x3d6   :  { %p639_p11 = pnand %p637_p10, %p634_p9 }
 0x3d8   :  { %642 = shalt.err (!%p639_p11)
}
 0x3d9   :  { %406 = dma.vmem_to_hbm [thread:$0]  %s404_s22, 128, %s797_s6, [#allocation4]  }
 0x3da   :  { %649 = dma.done.wait [#allocation4], 128  }
 0x3db   :  { %650 = vsyncadd [#allocation4], 4294967168 }
 0x3dc   :  { %410 = vsyncpa [#allocation3], 1 }
 0x3dd   :  { %411 = vsyncpa [#allocation6], 1 }
 0x3de   :  { %412 = vsyncpa [#allocation9], 1 }
 0x3df   :  { %413 = vsyncpa [#allocation4], 1 }

</bundles_post_ra>
